<compile_context>
chip_gen: v5e
topology: v5e:2x2
jax: 0.10.0
libtpu: 0.0.40
codegen_flags: <defaults>
</compile_context>

<pallas_src>
import functools
import math

import jax
import jax.numpy as jnp
from jax.experimental import pallas as pl
from jax.experimental.pallas import tpu as pltpu

_EPS = 1e-6


# ------------------------------ shared in-kernel math ------------------------

def _layernorm_f32(x, g, b, eps):
    # Annotated-Transformer LayerNorm: UNBIASED variance (divisor D-1) and eps
    # added to std (not to var). Keep in f32 (VPU) regardless of matmul dtype.
    d = x.shape[-1]
    mean = jnp.mean(x, axis=-1, keepdims=True)
    diff = x - mean
    var = jnp.sum(diff * diff, axis=-1, keepdims=True) / (d - 1)
    return g * diff / (jnp.sqrt(var) + eps) + b


# ----------------------------- fused sublayer kernels ------------------------

def _attn_sublayer_kernel(x_ref, kv_ref, mask_ref,
                          lng_ref, lnb_ref,
                          wq_ref, bq_ref, wkv_ref, bkv_ref, wo_ref, bo_ref,
                          o_ref, *, n_heads, self_attn, eps):
    # x_ref: [1, T, D] residual stream; kv_ref: [1, S, D] key/value source
    # mask_ref: [1, Tq or 1, S] float mask (0 == masked out)
    x = x_ref[0].astype(jnp.float32)                       # [T, D]
    T, D = x.shape
    d_k = D // n_heads
    scale = 1.0 / math.sqrt(d_k)

    # fused pre-norm prologue (f32 VPU work rides under the MXU)
    xn = _layernorm_f32(x, lng_ref[...], lnb_ref[...], eps)
    xn_b = xn.astype(jnp.bfloat16)

    if self_attn:
        kv_b = xn_b                                        # q = k = v = LN(x)
    else:
        kv_b = kv_ref[0].astype(jnp.bfloat16)              # k = v = memory

    # projections: Q, and K|V fused into a single [D, 2D] matmul
    q = jnp.dot(xn_b, wq_ref[...], preferred_element_type=jnp.float32) + bq_ref[...]
    kv = jnp.dot(kv_b, wkv_ref[...], preferred_element_type=jnp.float32) + bkv_ref[...]
    k = kv[:, :D]
    v = kv[:, D:]

    qs = (q * scale).astype(jnp.bfloat16)   # fold 1/sqrt(d_k) into Q (cheaper)
    ks = k.astype(jnp.bfloat16)
    vs = v.astype(jnp.bfloat16)

    mask2d = mask_ref[0]                    # [Tq or 1, S]; broadcasts over rows

    outs = []
    for i in range(n_heads):                # head split via static lane slices
        sl = slice(i * d_k, (i + 1) * d_k)
        s_i = jnp.einsum("qd,kd->qk", qs[:, sl], ks[:, sl],
                         preferred_element_type=jnp.float32)       # [T, S] f32
        s_i = jnp.where(mask2d == 0, -1e9, s_i)
        s_i = s_i - jnp.max(s_i, axis=-1, keepdims=True)
        p_i = jnp.exp(s_i)
        p_i = p_i * pl.reciprocal(jnp.sum(p_i, axis=-1, keepdims=True),
                                  approx=True)
        outs.append(jnp.dot(p_i.astype(jnp.bfloat16), vs[:, sl],
                            preferred_element_type=jnp.float32))   # [T, d_k]
    ctx = jnp.concatenate(outs, axis=-1).astype(jnp.bfloat16)      # head merge

    out = jnp.dot(ctx, wo_ref[...], preferred_element_type=jnp.float32) + bo_ref[...]
    o_ref[0] = (x + out).astype(o_ref.dtype)               # fused residual add


def _ffn_sublayer_kernel(x_ref, lng_ref, lnb_ref,
                         w1_ref, b1_ref, w2_ref, b2_ref, o_ref, *, eps):
    x = x_ref[...].astype(jnp.float32)                     # [rb, D]
    xn = _layernorm_f32(x, lng_ref[...], lnb_ref[...], eps)
    h = jnp.dot(xn.astype(jnp.bfloat16), w1_ref[...],
                preferred_element_type=jnp.float32) + b1_ref[...]
    h = jnp.maximum(h, 0.0)                                # ReLU (dropout = id)
    out = jnp.dot(h.astype(jnp.bfloat16), w2_ref[...],
                  preferred_element_type=jnp.float32) + b2_ref[...]
    o_ref[...] = (x + out).astype(o_ref.dtype)             # fused residual add


def _final_norm_kernel(x_ref, g_ref, b_ref, o_ref, *, eps):
    x = x_ref[...].astype(jnp.float32)
    o_ref[...] = _layernorm_f32(x, g_ref[...], b_ref[...], eps).astype(o_ref.dtype)


# ------------------------------ pallas_call wrappers -------------------------

def _compiler_params():
    return pltpu.CompilerParams(dimension_semantics=("parallel",))


def _row_block(n):
    # Row tile for [N, D] kernels: 256 keeps FFN intermediates well inside the
    # v7x 64 MiB VMEM budget; fall back to the full extent for small demos.
    return 256 if n % 256 == 0 else n


def attn_sublayer(x, kv_src, mask, p, ln_g, ln_b, n_heads, self_attn):
    B, T, D = x.shape
    S = kv_src.shape[1]
    Mq = mask.shape[1]
    row_map = lambda b: (b, 0, 0)
    const2 = lambda b: (0, 0)
    kernel = functools.partial(_attn_sublayer_kernel, n_heads=n_heads,
                               self_attn=self_attn, eps=_EPS)
    return pl.pallas_call(
        kernel,
        grid=(B,),
        in_specs=[
            pl.BlockSpec((1, T, D), row_map),            # x (residual stream)
            pl.BlockSpec((1, S, D), row_map),            # kv source (memory/x)
            pl.BlockSpec((1, Mq, S), row_map),           # mask (per batch only)
            pl.BlockSpec((1, D), const2),                # ln gamma
            pl.BlockSpec((1, D), const2),                # ln beta
            pl.BlockSpec((D, D), const2),                # wq   (VMEM-resident)
            pl.BlockSpec((1, D), const2),                # bq
            pl.BlockSpec((D, 2 * D), const2),            # wk|wv fused
            pl.BlockSpec((1, 2 * D), const2),            # bk|bv fused
            pl.BlockSpec((D, D), const2),                # wo
            pl.BlockSpec((1, D), const2),                # bo
        ],
        out_specs=pl.BlockSpec((1, T, D), row_map),
        out_shape=jax.ShapeDtypeStruct((B, T, D), x.dtype),
        compiler_params=_compiler_params(),
    )(x, kv_src, mask, ln_g, ln_b,
      p["wq"], p["bq"], p["wkv"], p["bkv"], p["wo"], p["bo"])


def ffn_sublayer(x, lp):
    B, T, D = x.shape
    n = B * T
    rb = _row_block(n)
    dff = lp["w1"].shape[1]
    x2d = x.reshape(n, D)
    const2 = lambda i: (0, 0)
    out = pl.pallas_call(
        functools.partial(_ffn_sublayer_kernel, eps=_EPS),
        grid=(n // rb,),
        in_specs=[
            pl.BlockSpec((rb, D), lambda i: (i, 0)),     # activation row tile
            pl.BlockSpec((1, D), const2),                # ln gamma
            pl.BlockSpec((1, D), const2),                # ln beta
            pl.BlockSpec((D, dff), const2),              # w1 (VMEM-resident)
            pl.BlockSpec((1, dff), const2),              # b1
            pl.BlockSpec((dff, D), const2),              # w2
            pl.BlockSpec((1, D), const2),                # b2
        ],
        out_specs=pl.BlockSpec((rb, D), lambda i: (i, 0)),
        out_shape=jax.ShapeDtypeStruct((n, D), x.dtype),
        compiler_params=_compiler_params(),
    )(x2d, lp["ln2_g"], lp["ln2_b"], lp["w1"], lp["b1"], lp["w2"], lp["b2"])
    return out.reshape(B, T, D)


def final_norm(x, g, b):
    B, T, D = x.shape
    n = B * T
    rb = _row_block(n)
    x2d = x.reshape(n, D)
    out = pl.pallas_call(
        functools.partial(_final_norm_kernel, eps=_EPS),
        grid=(n // rb,),
        in_specs=[
            pl.BlockSpec((rb, D), lambda i: (i, 0)),
            pl.BlockSpec((1, D), lambda i: (0, 0)),
            pl.BlockSpec((1, D), lambda i: (0, 0)),
        ],
        out_specs=pl.BlockSpec((rb, D), lambda i: (i, 0)),
        out_shape=jax.ShapeDtypeStruct((n, D), x.dtype),
        compiler_params=_compiler_params(),
    )(x2d, g, b)
    return out.reshape(B, T, D)


# --------------------------------- model glue --------------------------------

def decoder_forward(params, x, memory, src_mask, tgt_mask, n_heads):
    for lp in params["layers"]:
        # sublayer 0: pre-norm + masked self-attention + residual (one kernel)
        x = attn_sublayer(x, x, tgt_mask, lp["self_attn"],
                          lp["ln0_g"], lp["ln0_b"], n_heads, self_attn=True)
        # sublayer 1: pre-norm + cross-attention over encoder memory + residual
        x = attn_sublayer(x, memory, src_mask, lp["src_attn"],
                          lp["ln1_g"], lp["ln1_b"], n_heads, self_attn=False)
        # sublayer 2: pre-norm + position-wise FFN + residual (one kernel)
        x = ffn_sublayer(x, lp)
    # Decoder.norm
    return final_norm(x, params["norm_g"], params["norm_b"])


def init_params(key, n_layers, d_model, d_ff):
    keys = iter(jax.random.split(key, n_layers * 12 + 1))

    def dense(din, dout):
        # matmul weights stored bf16 (MXU operands); biases kept f32.
        w = jax.random.normal(next(keys), (din, dout), jnp.float32) * 0.05
        b = jnp.zeros((1, dout), jnp.float32)
        return w.astype(jnp.bfloat16), b

    layers = []
    for _ in range(n_layers):
        lp = {}
        for name in ("self_attn", "src_attn"):
            wq, bq = dense(d_model, d_model)
            wk, bk = dense(d_model, d_model)
            wv, bv = dense(d_model, d_model)
            wo, bo = dense(d_model, d_model)
            lp[name] = {
                "wq": wq, "bq": bq,
                "wkv": jnp.concatenate([wk, wv], axis=1),   # fused K|V weights
                "bkv": jnp.concatenate([bk, bv], axis=1),
                "wo": wo, "bo": bo,
            }
        lp["w1"], lp["b1"] = dense(d_model, d_ff)
        lp["w2"], lp["b2"] = dense(d_ff, d_model)
        for i in range(3):
            lp[f"ln{i}_g"] = jnp.ones((1, d_model), jnp.float32)
            lp[f"ln{i}_b"] = jnp.zeros((1, d_model), jnp.float32)
        layers.append(lp)
    return {
        "layers": layers,
        "norm_g": jnp.ones((1, d_model), jnp.float32),
        "norm_b": jnp.zeros((1, d_model), jnp.float32),
    }


if __name__ == "__main__":
    B, T, S, D, H, DFF, NLAYERS = 2, 8, 8, 32, 4, 64, 2

    root = jax.random.PRNGKey(0)
    kx, kmem, kparams = jax.random.split(root, 3)

    x = jax.random.normal(kx, (B, T, D), jnp.float32)
    memory = jax.random.normal(kmem, (B, S, D), jnp.float32)
    src_mask = jnp.ones((B, 1, S), jnp.float32)                       # no src padding
    tgt_mask = jnp.broadcast_to(jnp.tril(jnp.ones((T, T), jnp.float32)),
                                (B, T, T))                            # causal mask

    params = init_params(kparams, NLAYERS, D, DFF)

    out = decoder_forward(params, x, memory, src_mask, tgt_mask, n_heads=H)
    jax.block_until_ready(out)
    assert out.shape == (B, T, D)
    print("KERNEL_OK")
</pallas_src>

<mosaic_0001>
module attributes {stable_mosaic.version = 11 : i64} {
  func.func @_attn_sublayer_kernel(%arg0: i32, %arg1: memref<1x8x32xf32, #tpu.memory_space<vmem>>, %arg2: memref<1x8x32xf32, #tpu.memory_space<vmem>>, %arg3: memref<1x8x8xf32, #tpu.memory_space<vmem>>, %arg4: memref<1x32xf32, #tpu.memory_space<vmem>>, %arg5: memref<1x32xf32, #tpu.memory_space<vmem>>, %arg6: memref<32x32xbf16, #tpu.memory_space<vmem>>, %arg7: memref<1x32xf32, #tpu.memory_space<vmem>>, %arg8: memref<32x64xbf16, #tpu.memory_space<vmem>>, %arg9: memref<1x64xf32, #tpu.memory_space<vmem>>, %arg10: memref<32x32xbf16, #tpu.memory_space<vmem>>, %arg11: memref<1x32xf32, #tpu.memory_space<vmem>>, %arg12: memref<1x8x32xf32, #tpu.memory_space<vmem>>) attributes {dimension_semantics = [#tpu.dimension_semantics<parallel>], iteration_bounds = array<i64: 2>, scalar_prefetch = 0 : i64, scratch_operands = 0 : i64, tpu.core_type = #tpu.core_type<tc>, window_params = [{transform_indices = @transform_0, window_bounds = array<i64: 1, 8, 32>}, {transform_indices = @transform_1, window_bounds = array<i64: 1, 8, 32>}, {transform_indices = @transform_2, window_bounds = array<i64: 1, 8, 8>}, {pipeline_mode = #tpu.pipeline_mode<synchronous>, transform_indices = @transform_3, window_bounds = array<i64: 1, 32>}, {pipeline_mode = #tpu.pipeline_mode<synchronous>, transform_indices = @transform_4, window_bounds = array<i64: 1, 32>}, {pipeline_mode = #tpu.pipeline_mode<synchronous>, transform_indices = @transform_5, window_bounds = array<i64: 32, 32>}, {pipeline_mode = #tpu.pipeline_mode<synchronous>, transform_indices = @transform_6, window_bounds = array<i64: 1, 32>}, {pipeline_mode = #tpu.pipeline_mode<synchronous>, transform_indices = @transform_7, window_bounds = array<i64: 32, 64>}, {pipeline_mode = #tpu.pipeline_mode<synchronous>, transform_indices = @transform_8, window_bounds = array<i64: 1, 64>}, {pipeline_mode = #tpu.pipeline_mode<synchronous>, transform_indices = @transform_9, window_bounds = array<i64: 32, 32>}, {pipeline_mode = #tpu.pipeline_mode<synchronous>, transform_indices = @transform_10, window_bounds = array<i64: 1, 32>}, {transform_indices = @transform_11, window_bounds = array<i64: 1, 8, 32>}]} {
    %c0 = arith.constant 0 : index
    %c0_0 = arith.constant 0 : index
    %c0_1 = arith.constant 0 : index
    %0 = vector.load %arg1[%c0, %c0_0, %c0_1] : memref<1x8x32xf32, #tpu.memory_space<vmem>>, vector<1x8x32xf32>
    %1 = vector.shape_cast %0 : vector<1x8x32xf32> to vector<8x32xf32>
    %c0_2 = arith.constant 0 : index
    %c0_3 = arith.constant 0 : index
    %2 = vector.load %arg4[%c0_2, %c0_3] : memref<1x32xf32, #tpu.memory_space<vmem>>, vector<1x32xf32>
    %c0_4 = arith.constant 0 : index
    %c0_5 = arith.constant 0 : index
    %3 = vector.load %arg5[%c0_4, %c0_5] : memref<1x32xf32, #tpu.memory_space<vmem>>, vector<1x32xf32>
    %cst = arith.constant dense<0.000000e+00> : vector<8xf32>
    %4 = vector.multi_reduction <add>, %1, %cst [1] : vector<8x32xf32> to vector<8xf32>
    %5 = vector.shape_cast %4 : vector<8xf32> to vector<8x1xf32>
    %cst_6 = arith.constant 3.200000e+01 : f32
    %6 = vector.broadcast %cst_6 : f32 to vector<8x1xf32>
    %7 = arith.divf %5, %6 : vector<8x1xf32>
    %8 = vector.broadcast %7 : vector<8x1xf32> to vector<8x32xf32>
    %9 = arith.subf %1, %8 : vector<8x32xf32>
    %10 = arith.mulf %9, %9 : vector<8x32xf32>
    %cst_7 = arith.constant dense<0.000000e+00> : vector<8xf32>
    %11 = vector.multi_reduction <add>, %10, %cst_7 [1] : vector<8x32xf32> to vector<8xf32>
    %12 = vector.shape_cast %11 : vector<8xf32> to vector<8x1xf32>
    %cst_8 = arith.constant 3.100000e+01 : f32
    %13 = vector.broadcast %cst_8 : f32 to vector<8x1xf32>
    %14 = arith.divf %12, %13 : vector<8x1xf32>
    %15 = vector.broadcast %2 : vector<1x32xf32> to vector<8x32xf32>
    %16 = arith.mulf %15, %9 : vector<8x32xf32>
    %17 = math.sqrt %14 : vector<8x1xf32>
    %cst_9 = arith.constant 9.99999997E-7 : f32
    %18 = vector.broadcast %cst_9 : f32 to vector<8x1xf32>
    %19 = arith.addf %17, %18 : vector<8x1xf32>
    %20 = vector.broadcast %19 : vector<8x1xf32> to vector<8x32xf32>
    %21 = arith.divf %16, %20 : vector<8x32xf32>
    %22 = vector.broadcast %3 : vector<1x32xf32> to vector<8x32xf32>
    %23 = arith.addf %21, %22 : vector<8x32xf32>
    %24 = arith.truncf %23 : vector<8x32xf32> to vector<8x32xbf16>
    %c0_10 = arith.constant 0 : index
    %c0_11 = arith.constant 0 : index
    %25 = vector.load %arg6[%c0_10, %c0_11] : memref<32x32xbf16, #tpu.memory_space<vmem>>, vector<32x32xbf16>
    %cst_12 = arith.constant dense<0.000000e+00> : vector<8x32xf32>
    %26 = tpu.matmul %24, %25, %cst_12 {dimension_numbers = #tpu.dot_dimension_numbers<[1], [0], [0], [1], [0, 0, 1, 1], [], []>} : vector<8x32xbf16>, vector<32x32xbf16>, vector<8x32xf32> -> vector<8x32xf32>
    %c0_13 = arith.constant 0 : index
    %c0_14 = arith.constant 0 : index
    %27 = vector.load %arg7[%c0_13, %c0_14] : memref<1x32xf32, #tpu.memory_space<vmem>>, vector<1x32xf32>
    %28 = vector.broadcast %27 : vector<1x32xf32> to vector<8x32xf32>
    %29 = arith.addf %26, %28 : vector<8x32xf32>
    %c0_15 = arith.constant 0 : index
    %c0_16 = arith.constant 0 : index
    %30 = vector.load %arg8[%c0_15, %c0_16] : memref<32x64xbf16, #tpu.memory_space<vmem>>, vector<32x64xbf16>
    %cst_17 = arith.constant dense<0.000000e+00> : vector<8x64xf32>
    %31 = tpu.matmul %24, %30, %cst_17 {dimension_numbers = #tpu.dot_dimension_numbers<[1], [0], [0], [1], [0, 0, 1, 1], [], []>} : vector<8x32xbf16>, vector<32x64xbf16>, vector<8x64xf32> -> vector<8x64xf32>
    %c0_18 = arith.constant 0 : index
    %c0_19 = arith.constant 0 : index
    %32 = vector.load %arg9[%c0_18, %c0_19] : memref<1x64xf32, #tpu.memory_space<vmem>>, vector<1x64xf32>
    %33 = vector.broadcast %32 : vector<1x64xf32> to vector<8x64xf32>
    %34 = arith.addf %31, %33 : vector<8x64xf32>
    %35 = vector.extract_strided_slice %34 {offsets = [0, 0], sizes = [8, 32], strides = [1, 1]} : vector<8x64xf32> to vector<8x32xf32>
    %36 = vector.extract_strided_slice %34 {offsets = [0, 32], sizes = [8, 32], strides = [1, 1]} : vector<8x64xf32> to vector<8x32xf32>
    %cst_20 = arith.constant 0.353553385 : f32
    %37 = vector.broadcast %cst_20 : f32 to vector<8x32xf32>
    %38 = arith.mulf %29, %37 : vector<8x32xf32>
    %39 = arith.truncf %38 : vector<8x32xf32> to vector<8x32xbf16>
    %40 = arith.truncf %35 : vector<8x32xf32> to vector<8x32xbf16>
    %41 = arith.truncf %36 : vector<8x32xf32> to vector<8x32xbf16>
    %c0_21 = arith.constant 0 : index
    %c0_22 = arith.constant 0 : index
    %c0_23 = arith.constant 0 : index
    %42 = vector.load %arg3[%c0_21, %c0_22, %c0_23] : memref<1x8x8xf32, #tpu.memory_space<vmem>>, vector<1x8x8xf32>
    %43 = vector.shape_cast %42 : vector<1x8x8xf32> to vector<8x8xf32>
    %44 = vector.extract_strided_slice %39 {offsets = [0, 0], sizes = [8, 8], strides = [1, 1]} : vector<8x32xbf16> to vector<8x8xbf16>
    %45 = vector.extract_strided_slice %40 {offsets = [0, 0], sizes = [8, 8], strides = [1, 1]} : vector<8x32xbf16> to vector<8x8xbf16>
    "tpu.trace_start"() <{level = 10 : i32, message = "qd,kd->qk"}> : () -> ()
    %cst_24 = arith.constant dense<0.000000e+00> : vector<8x8xf32>
    %46 = tpu.matmul %44, %45, %cst_24 {dimension_numbers = #tpu.dot_dimension_numbers<[1], [1], [0], [0], [0, 0, 1, 0], [], []>} : vector<8x8xbf16>, vector<8x8xbf16>, vector<8x8xf32> -> vector<8x8xf32>
    %cst_25 = arith.constant 0.000000e+00 : f32
    "tpu.trace_stop"() : () -> ()
    %47 = vector.broadcast %cst_25 : f32 to vector<8x8xf32>
    %48 = arith.cmpf oeq, %43, %47 : vector<8x8xf32>
    %cst_26 = arith.constant -1.000000e+09 : f32
    %49 = vector.broadcast %cst_26 : f32 to vector<8x8xf32>
    %50 = arith.select %48, %49, %46 : vector<8x8xi1>, vector<8x8xf32>
    %cst_27 = arith.constant dense<0xFF800000> : vector<8xf32>
    %51 = vector.multi_reduction <maximumf>, %50, %cst_27 [1] : vector<8x8xf32> to vector<8xf32>
    %52 = vector.shape_cast %51 : vector<8xf32> to vector<8x1xf32>
    %53 = vector.broadcast %52 : vector<8x1xf32> to vector<8x8xf32>
    %54 = arith.subf %50, %53 : vector<8x8xf32>
    %55 = math.exp %54 : vector<8x8xf32>
    %cst_28 = arith.constant dense<0.000000e+00> : vector<8xf32>
    %56 = vector.multi_reduction <add>, %55, %cst_28 [1] : vector<8x8xf32> to vector<8xf32>
    %57 = vector.shape_cast %56 : vector<8xf32> to vector<8x1xf32>
    %58 = tpu.reciprocal %57 {approx = true} : vector<8x1xf32> -> vector<8x1xf32>
    %59 = vector.broadcast %58 : vector<8x1xf32> to vector<8x8xf32>
    %60 = arith.mulf %55, %59 : vector<8x8xf32>
    %61 = arith.truncf %60 : vector<8x8xf32> to vector<8x8xbf16>
    %62 = vector.extract_strided_slice %41 {offsets = [0, 0], sizes = [8, 8], strides = [1, 1]} : vector<8x32xbf16> to vector<8x8xbf16>
    %cst_29 = arith.constant dense<0.000000e+00> : vector<8x8xf32>
    %63 = tpu.matmul %61, %62, %cst_29 {dimension_numbers = #tpu.dot_dimension_numbers<[1], [0], [0], [1], [0, 0, 1, 1], [], []>} : vector<8x8xbf16>, vector<8x8xbf16>, vector<8x8xf32> -> vector<8x8xf32>
    %64 = vector.extract_strided_slice %39 {offsets = [0, 8], sizes = [8, 8], strides = [1, 1]} : vector<8x32xbf16> to vector<8x8xbf16>
    %65 = vector.extract_strided_slice %40 {offsets = [0, 8], sizes = [8, 8], strides = [1, 1]} : vector<8x32xbf16> to vector<8x8xbf16>
    "tpu.trace_start"() <{level = 10 : i32, message = "qd,kd->qk"}> : () -> ()
    %cst_30 = arith.constant dense<0.000000e+00> : vector<8x8xf32>
    %66 = tpu.matmul %64, %65, %cst_30 {dimension_numbers = #tpu.dot_dimension_numbers<[1], [1], [0], [0], [0, 0, 1, 0], [], []>} : vector<8x8xbf16>, vector<8x8xbf16>, vector<8x8xf32> -> vector<8x8xf32>
    %cst_31 = arith.constant 0.000000e+00 : f32
    "tpu.trace_stop"() : () -> ()
    %67 = vector.broadcast %cst_31 : f32 to vector<8x8xf32>
    %68 = arith.cmpf oeq, %43, %67 : vector<8x8xf32>
    %cst_32 = arith.constant -1.000000e+09 : f32
    %69 = vector.broadcast %cst_32 : f32 to vector<8x8xf32>
    %70 = arith.select %68, %69, %66 : vector<8x8xi1>, vector<8x8xf32>
    %cst_33 = arith.constant dense<0xFF800000> : vector<8xf32>
    %71 = vector.multi_reduction <maximumf>, %70, %cst_33 [1] : vector<8x8xf32> to vector<8xf32>
    %72 = vector.shape_cast %71 : vector<8xf32> to vector<8x1xf32>
    %73 = vector.broadcast %72 : vector<8x1xf32> to vector<8x8xf32>
    %74 = arith.subf %70, %73 : vector<8x8xf32>
    %75 = math.exp %74 : vector<8x8xf32>
    %cst_34 = arith.constant dense<0.000000e+00> : vector<8xf32>
    %76 = vector.multi_reduction <add>, %75, %cst_34 [1] : vector<8x8xf32> to vector<8xf32>
    %77 = vector.shape_cast %76 : vector<8xf32> to vector<8x1xf32>
    %78 = tpu.reciprocal %77 {approx = true} : vector<8x1xf32> -> vector<8x1xf32>
    %79 = vector.broadcast %78 : vector<8x1xf32> to vector<8x8xf32>
    %80 = arith.mulf %75, %79 : vector<8x8xf32>
    %81 = arith.truncf %80 : vector<8x8xf32> to vector<8x8xbf16>
    %82 = vector.extract_strided_slice %41 {offsets = [0, 8], sizes = [8, 8], strides = [1, 1]} : vector<8x32xbf16> to vector<8x8xbf16>
    %cst_35 = arith.constant dense<0.000000e+00> : vector<8x8xf32>
    %83 = tpu.matmul %81, %82, %cst_35 {dimension_numbers = #tpu.dot_dimension_numbers<[1], [0], [0], [1], [0, 0, 1, 1], [], []>} : vector<8x8xbf16>, vector<8x8xbf16>, vector<8x8xf32> -> vector<8x8xf32>
    %84 = vector.extract_strided_slice %39 {offsets = [0, 16], sizes = [8, 8], strides = [1, 1]} : vector<8x32xbf16> to vector<8x8xbf16>
    %85 = vector.extract_strided_slice %40 {offsets = [0, 16], sizes = [8, 8], strides = [1, 1]} : vector<8x32xbf16> to vector<8x8xbf16>
    "tpu.trace_start"() <{level = 10 : i32, message = "qd,kd->qk"}> : () -> ()
    %cst_36 = arith.constant dense<0.000000e+00> : vector<8x8xf32>
    %86 = tpu.matmul %84, %85, %cst_36 {dimension_numbers = #tpu.dot_dimension_numbers<[1], [1], [0], [0], [0, 0, 1, 0], [], []>} : vector<8x8xbf16>, vector<8x8xbf16>, vector<8x8xf32> -> vector<8x8xf32>
    %cst_37 = arith.constant 0.000000e+00 : f32
    "tpu.trace_stop"() : () -> ()
    %87 = vector.broadcast %cst_37 : f32 to vector<8x8xf32>
    %88 = arith.cmpf oeq, %43, %87 : vector<8x8xf32>
    %cst_38 = arith.constant -1.000000e+09 : f32
    %89 = vector.broadcast %cst_38 : f32 to vector<8x8xf32>
    %90 = arith.select %88, %89, %86 : vector<8x8xi1>, vector<8x8xf32>
    %cst_39 = arith.constant dense<0xFF800000> : vector<8xf32>
    %91 = vector.multi_reduction <maximumf>, %90, %cst_39 [1] : vector<8x8xf32> to vector<8xf32>
    %92 = vector.shape_cast %91 : vector<8xf32> to vector<8x1xf32>
    %93 = vector.broadcast %92 : vector<8x1xf32> to vector<8x8xf32>
    %94 = arith.subf %90, %93 : vector<8x8xf32>
    %95 = math.exp %94 : vector<8x8xf32>
    %cst_40 = arith.constant dense<0.000000e+00> : vector<8xf32>
    %96 = vector.multi_reduction <add>, %95, %cst_40 [1] : vector<8x8xf32> to vector<8xf32>
    %97 = vector.shape_cast %96 : vector<8xf32> to vector<8x1xf32>
    %98 = tpu.reciprocal %97 {approx = true} : vector<8x1xf32> -> vector<8x1xf32>
    %99 = vector.broadcast %98 : vector<8x1xf32> to vector<8x8xf32>
    %100 = arith.mulf %95, %99 : vector<8x8xf32>
    %101 = arith.truncf %100 : vector<8x8xf32> to vector<8x8xbf16>
    %102 = vector.extract_strided_slice %41 {offsets = [0, 16], sizes = [8, 8], strides = [1, 1]} : vector<8x32xbf16> to vector<8x8xbf16>
    %cst_41 = arith.constant dense<0.000000e+00> : vector<8x8xf32>
    %103 = tpu.matmul %101, %102, %cst_41 {dimension_numbers = #tpu.dot_dimension_numbers<[1], [0], [0], [1], [0, 0, 1, 1], [], []>} : vector<8x8xbf16>, vector<8x8xbf16>, vector<8x8xf32> -> vector<8x8xf32>
    %104 = vector.extract_strided_slice %39 {offsets = [0, 24], sizes = [8, 8], strides = [1, 1]} : vector<8x32xbf16> to vector<8x8xbf16>
    %105 = vector.extract_strided_slice %40 {offsets = [0, 24], sizes = [8, 8], strides = [1, 1]} : vector<8x32xbf16> to vector<8x8xbf16>
    "tpu.trace_start"() <{level = 10 : i32, message = "qd,kd->qk"}> : () -> ()
    %cst_42 = arith.constant dense<0.000000e+00> : vector<8x8xf32>
    %106 = tpu.matmul %104, %105, %cst_42 {dimension_numbers = #tpu.dot_dimension_numbers<[1], [1], [0], [0], [0, 0, 1, 0], [], []>} : vector<8x8xbf16>, vector<8x8xbf16>, vector<8x8xf32> -> vector<8x8xf32>
    %cst_43 = arith.constant 0.000000e+00 : f32
    "tpu.trace_stop"() : () -> ()
    %107 = vector.broadcast %cst_43 : f32 to vector<8x8xf32>
    %108 = arith.cmpf oeq, %43, %107 : vector<8x8xf32>
    %cst_44 = arith.constant -1.000000e+09 : f32
    %109 = vector.broadcast %cst_44 : f32 to vector<8x8xf32>
    %110 = arith.select %108, %109, %106 : vector<8x8xi1>, vector<8x8xf32>
    %cst_45 = arith.constant dense<0xFF800000> : vector<8xf32>
    %111 = vector.multi_reduction <maximumf>, %110, %cst_45 [1] : vector<8x8xf32> to vector<8xf32>
    %112 = vector.shape_cast %111 : vector<8xf32> to vector<8x1xf32>
    %113 = vector.broadcast %112 : vector<8x1xf32> to vector<8x8xf32>
    %114 = arith.subf %110, %113 : vector<8x8xf32>
    %115 = math.exp %114 : vector<8x8xf32>
    %cst_46 = arith.constant dense<0.000000e+00> : vector<8xf32>
    %116 = vector.multi_reduction <add>, %115, %cst_46 [1] : vector<8x8xf32> to vector<8xf32>
    %117 = vector.shape_cast %116 : vector<8xf32> to vector<8x1xf32>
    %118 = tpu.reciprocal %117 {approx = true} : vector<8x1xf32> -> vector<8x1xf32>
    %119 = vector.broadcast %118 : vector<8x1xf32> to vector<8x8xf32>
    %120 = arith.mulf %115, %119 : vector<8x8xf32>
    %121 = arith.truncf %120 : vector<8x8xf32> to vector<8x8xbf16>
    %122 = vector.extract_strided_slice %41 {offsets = [0, 24], sizes = [8, 8], strides = [1, 1]} : vector<8x32xbf16> to vector<8x8xbf16>
    %cst_47 = arith.constant dense<0.000000e+00> : vector<8x8xf32>
    %123 = tpu.matmul %121, %122, %cst_47 {dimension_numbers = #tpu.dot_dimension_numbers<[1], [0], [0], [1], [0, 0, 1, 1], [], []>} : vector<8x8xbf16>, vector<8x8xbf16>, vector<8x8xf32> -> vector<8x8xf32>
    %124 = tpu.concatenate %63, %83, %103, %123 in 1 : vector<8x8xf32>, vector<8x8xf32>, vector<8x8xf32>, vector<8x8xf32> -> vector<8x32xf32>
    %125 = arith.truncf %124 : vector<8x32xf32> to vector<8x32xbf16>
    %c0_48 = arith.constant 0 : index
    %c0_49 = arith.constant 0 : index
    %126 = vector.load %arg10[%c0_48, %c0_49] : memref<32x32xbf16, #tpu.memory_space<vmem>>, vector<32x32xbf16>
    %cst_50 = arith.constant dense<0.000000e+00> : vector<8x32xf32>
    %127 = tpu.matmul %125, %126, %cst_50 {dimension_numbers = #tpu.dot_dimension_numbers<[1], [0], [0], [1], [0, 0, 1, 1], [], []>} : vector<8x32xbf16>, vector<32x32xbf16>, vector<8x32xf32> -> vector<8x32xf32>
    %c0_51 = arith.constant 0 : index
    %c0_52 = arith.constant 0 : index
    %128 = vector.load %arg11[%c0_51, %c0_52] : memref<1x32xf32, #tpu.memory_space<vmem>>, vector<1x32xf32>
    %129 = vector.broadcast %128 : vector<1x32xf32> to vector<8x32xf32>
    %130 = arith.addf %127, %129 : vector<8x32xf32>
    %131 = arith.addf %1, %130 : vector<8x32xf32>
    %c0_53 = arith.constant 0 : index
    %c0_54 = arith.constant 0 : index
    %c0_55 = arith.constant 0 : index
    %132 = vector.load %arg12[%c0_53, %c0_54, %c0_55] : memref<1x8x32xf32, #tpu.memory_space<vmem>>, vector<1x8x32xf32>
    %133 = vector.shape_cast %132 : vector<1x8x32xf32> to vector<8x32xf32>
    %134 = vector.shape_cast %131 : vector<8x32xf32> to vector<1x8x32xf32>
    tpu.vector_store %arg12[%c0_53, %c0_54, %c0_55], %134 {strides = array<i32>} : memref<1x8x32xf32, #tpu.memory_space<vmem>>, vector<1x8x32xf32>,
    return
  }
  func.func @transform_0(%arg0: i32) -> (i32, i32, i32) {
    %c0_i32 = arith.constant 0 : i32
    %c0_i32_0 = arith.constant 0 : i32
    %c0_i32_1 = arith.constant 0 : i32
    return %arg0, %c0_i32, %c0_i32_0 : i32, i32, i32
  }
  func.func @transform_1(%arg0: i32) -> (i32, i32, i32) {
    %c0_i32 = arith.constant 0 : i32
    %c0_i32_0 = arith.constant 0 : i32
    %c0_i32_1 = arith.constant 0 : i32
    return %arg0, %c0_i32, %c0_i32_0 : i32, i32, i32
  }
  func.func @transform_2(%arg0: i32) -> (i32, i32, i32) {
    %c0_i32 = arith.constant 0 : i32
    %c0_i32_0 = arith.constant 0 : i32
    %c0_i32_1 = arith.constant 0 : i32
    return %arg0, %c0_i32, %c0_i32_0 : i32, i32, i32
  }
  func.func @transform_3(%arg0: i32) -> (i32, i32) {
    %c0_i32 = arith.constant 0 : i32
    %c0_i32_0 = arith.constant 0 : i32
    %c0_i32_1 = arith.constant 0 : i32
    return %c0_i32, %c0_i32_0 : i32, i32
  }
  func.func @transform_4(%arg0: i32) -> (i32, i32) {
    %c0_i32 = arith.constant 0 : i32
    %c0_i32_0 = arith.constant 0 : i32
    %c0_i32_1 = arith.constant 0 : i32
    return %c0_i32, %c0_i32_0 : i32, i32
  }
  func.func @transform_5(%arg0: i32) -> (i32, i32) {
    %c0_i32 = arith.constant 0 : i32
    %c0_i32_0 = arith.constant 0 : i32
    %c0_i32_1 = arith.constant 0 : i32
    return %c0_i32, %c0_i32_0 : i32, i32
  }
  func.func @transform_6(%arg0: i32) -> (i32, i32) {
    %c0_i32 = arith.constant 0 : i32
    %c0_i32_0 = arith.constant 0 : i32
    %c0_i32_1 = arith.constant 0 : i32
    return %c0_i32, %c0_i32_0 : i32, i32
  }
  func.func @transform_7(%arg0: i32) -> (i32, i32) {
    %c0_i32 = arith.constant 0 : i32
    %c0_i32_0 = arith.constant 0 : i32
    %c0_i32_1 = arith.constant 0 : i32
    return %c0_i32, %c0_i32_0 : i32, i32
  }
  func.func @transform_8(%arg0: i32) -> (i32, i32) {
    %c0_i32 = arith.constant 0 : i32
    %c0_i32_0 = arith.constant 0 : i32
    %c0_i32_1 = arith.constant 0 : i32
    return %c0_i32, %c0_i32_0 : i32, i32
  }
  func.func @transform_9(%arg0: i32) -> (i32, i32) {
    %c0_i32 = arith.constant 0 : i32
    %c0_i32_0 = arith.constant 0 : i32
    %c0_i32_1 = arith.constant 0 : i32
    return %c0_i32, %c0_i32_0 : i32, i32
  }
  func.func @transform_10(%arg0: i32) -> (i32, i32) {
    %c0_i32 = arith.constant 0 : i32
    %c0_i32_0 = arith.constant 0 : i32
    %c0_i32_1 = arith.constant 0 : i32
    return %c0_i32, %c0_i32_0 : i32, i32
  }
  func.func @transform_11(%arg0: i32) -> (i32, i32, i32) {
    %c0_i32 = arith.constant 0 : i32
    %c0_i32_0 = arith.constant 0 : i32
    %c0_i32_1 = arith.constant 0 : i32
    return %arg0, %c0_i32, %c0_i32_0 : i32, i32, i32
  }
}

</mosaic_0001>

<bundles_post_ra>
// kernel: tpu_custom_call.1
= control target key start
LH: loop header
LB: loop body
LE: loop exit
PB: predicated region body
PF: predicated region fallthrough
CT: control target
= control target key end

     0   :  { %s1940_s0 = inlined_call_operand.hbm [shape: f32[2,8,32], index: 0, kind: input, shape index: {}]   ;;  %s1941_s1 = inlined_call_operand.hbm [shape: f32[2,8,32], index: 1, kind: input, shape index: {}]   ;;  %s1942_s2 = inlined_call_operand.hbm [shape: f32[2,8,8], index: 2, kind: input, shape index: {}]   ;;  %s1943_s3 = inlined_call_operand.vmem [shape: f32[1,32], index: 3, kind: input, shape index: {}]   ;;  %s1944_s4 = inlined_call_operand.vmem [shape: f32[1,32], index: 4, kind: input, shape index: {}]   ;;  %s1945_s5 = inlined_call_operand.hbm [shape: bf16[32,32], index: 5, kind: input, shape index: {}]   ;;  %s1946_s6 = inlined_call_operand.vmem [shape: f32[1,32], index: 6, kind: input, shape index: {}]   ;;  %s1947_s7 = inlined_call_operand.hbm [shape: bf16[32,64], index: 7, kind: input, shape index: {}]   ;;  %s1948_s8 = inlined_call_operand.vmem [shape: f32[1,64], index: 8, kind: input, shape index: {}]   ;;  %s1949_s9 = inlined_call_operand.hbm [shape: bf16[32,32], index: 9, kind: input, shape index: {}]   ;;  %s1950_s10 = inlined_call_operand.vmem [shape: f32[1,32], index: 10, kind: input, shape index: {}]   ;;  %s1951_s11 = inlined_call_operand.hbm [shape: f32[2,8,32], index: 11, kind: output, shape index: {}]  }
   0x1   :  { %1966 = sst [smem:[#allocation25_spill]] %s1941_s1 }
   0x2   :  { %1967 = sst [smem:[#allocation26_spill]] %s1945_s5 }
   0x3   :  { %1968 = sst [smem:[#allocation27_spill]] %s1948_s8 }
   0x4   :  { %1969 = sst [smem:[#allocation28_spill]] %s1950_s10 }
   0x5   :  { %1970 = sst [smem:[#allocation29_spill]] %s1951_s11 }
   0x6   :  { %16 = vsyncpa [#allocation3], 0 }
   0x7   :  { %18 = vsyncpa [#allocation3 + $0x1], 0 }
   0x8   :  { %19 = vsyncpa [#allocation6], 0 }
   0x9   :  { %21 = vsyncpa [#allocation6 + $0x1], 0 }
   0xa   :  { %22 = vsyncpa [#allocation9], 0 }
   0xb   :  { %23 = vsyncpa [#allocation12], 0 }
   0xc   :  { %24 = vsyncpa [#allocation4], 0 }
   0xd   :  { %26 = vsyncpa [#allocation4 + $0x1], 0  ;;  %s1646_s17 = smov 0   ;;  %s1648_s18 = smov 0  }
   0xe   :  { %s1650_s19 = smov 0   ;;  %s1652_s20 = smov 0  }
   0xf LB: > { %1971 = sst [smem:[#allocation19_spill]] %s1555_s17  ;;  %s1670_s24 = sadd.s32 4294967295, %s1567_s20   ;;  %s1567_s20 = sphi %s1652_s20, %s2000_s20   ;;  %s1563_s19 = sphi %s1650_s19, %s2004_s19   ;;  %s1559_s18 = sphi %s1648_s18, %s2003_s18   ;;  %s1555_s17 = sphi %s1646_s17, %s2002_s17  }
  0x10   : > { %1972 = sst [smem:[#allocation20_spill]] %s1567_s20  ;;  %p1116_p0 = scmp.ge.s32.totalorder %s1567_s20, 1 }
  0x11   : > { %s1973_s5 = sld [smem:[#allocation26_spill]]  ;;  %p1965_p1 = scmp.eq.s32.totalorder %s1670_s24, 0 }
  0x12   : > { %p309_p2 = scmp.lt.s32.totalorder %s1567_s20, 3  ;;  %s1569_s26 = smov [#allocation8]  }
  0x13   : > { %s328_s27 = sshll.u32 %s1569_s26, 4  ;;  %s1952_s29 = smov 64   ;;  %s329_s27 = int_to_ptr.vmem [resolvable:$true] %s328_s27 }
  0x14   : > { %p1675_p3 = pnand %p1116_p0, %p309_p2  ;;  %s1954_s30 = smov 4  }
  0x15   : > { %s1115_s12 = sadd.s32 4294967294, %s1567_s20   ;;  %s1695_s13 = sadd.s32 1, %s1567_s20  }
  0x16   : > { %p1199_p4 = pneg %p1675_p3  ;;  %1976 = sst [smem:[#allocation21_spill]] %s1695_s13 }
  0x17   : > { %s326_s23 = sshll.u32 %s1973_s5, 4  ;;  %s39_s14 = sadd.s32 1, %s1563_s19  ;;  %s327_s23 = int_to_ptr.hbm [resolvable:$true] %s326_s23 }
  0x18   : > { %p1684_p6 = pnand %p1199_p4, %p1965_p1  ;;  %s36_s15 = ssub.s32 %s1567_s20, %s1695_s13 }
  0x19   : > { %p46_p7 = scmp.ne.s32.totalorder %s1563_s19, %s1559_s18  ;;  %p37_p8 = scmp.eq.s32.totalorder %s36_s15, 0 }
  0x1a   : > { %1202 = dma.hbm_to_vmem [thread:$0]  (!%p1684_p6), %s327_s23, 256, %s329_s27, [#allocation9], %s1952_s29, %s1952_s29, %s1954_s30  }
  0x1b   : > { %p47_p9 = scmp.eq.s32.totalorder %s1567_s20, 0  ;;  %p52_p10 = scmp.ne.s32.totalorder %s1559_s18, %s1555_s17 }
  0x1c   : > { %p296_p11 = scmp.eq.s32.totalorder %s1670_s24, 1  ;;  %p302_p2 = scmp.eq.s32.totalorder %s1115_s12, 1 }
  0x1d   : > { %s1707_s16 = scalar_select %p37_p8, %s1563_s19, %s39_s14  }
  0x1e   : > { %p48_p12 = por %p47_p9, %p46_p7  ;;  %p1711_p13 = por %p1965_p1, %p52_p10 }
  0x1f   : > { %1977 = sst [smem:[#allocation22_spill]] %s1707_s16  ;;  %p1715_p0 = por %p296_p11, %p46_p7 }
  0x20   : > { %p1226_p4 = scmp.lt.s32.totalorder %s1567_s20, 2  ;;  %s1959_s23 = sand.u32 1, %s1563_s19  }
  0x21   : > { %s1979_s22 = scalar_select %p1715_p0, 1, 0 }
  0x22   : > { %p1721_p5 = por %p302_p2, %p52_p10  ;;  %s1727_s27 = sshll.u32 %s1959_s23, 3 }
  0x23   : > { %1980 = sst [smem:[#allocation23_spill]] %s1979_s22  ;;  %s1730_s14 = sshll.u32 %s1567_s20, 3 }
  0x24   : > { %s1981_s26 = scalar_select %p1721_p5, 1, 0 }
  0x25   : > { %p1732_p8 = pnand %p1226_p4, %p48_p12  ;;  %s398_s12 = sand.u32 1, %s1567_s20  }
  0x26   : > { %1982 = sst [smem:[#allocation24_spill]] %s1981_s26  ;;  %s402_s16 = scalar_lea.vmem [#allocation5], %s1727_s27 }
  0x27   : > { %s1984_s1 = sld [smem:[#allocation25_spill]]  ;;  %s410_s13 = sshll.u32 %s402_s16, 4  ;;  %s411_s13 = int_to_ptr.vmem [resolvable:$true] %s410_s13 }
  0x28   : > { %s343_s22 = sshll.u32 %s1947_s7, 4  ;;  %s1745_s11 = scalar_lea.sflag [#allocation6], %s398_s12  ;;  %s344_s22 = int_to_ptr.hbm [resolvable:$true] %s343_s22 }
  0x29   : > { %p1343_p9 = pneg %p1732_p8 }
  0x2d   : > { %s406_s5 = scalar_lea.hbm %s1984_s1, %s1730_s14  ;;  %s1346_s30 = scalar_lea.hbm %s1984_s1, 16 }
  0x2e   : > { %s408_s26 = sshll.u32 %s406_s5, 4  ;;  %s409_s26 = int_to_ptr.hbm [resolvable:$true] %s408_s26 }
  0x2f   : > { %s1339_s10 = sshra.s32 %s409_s26, 4  ;;  %s1340_s10 = int_to_ptr.hbm [resolvable:$true] %s1339_s10 }
  0x30   : > { %s1341_s8 = scalar_lea.hbm %s1340_s10, 8  ;;  %p1347_p12 = scmp.lt.s32.totalorder %s1340_s10, %s1984_s1 }
  0x31   : > { %p1342_p7 = scmp.ne.s32.totalorder %s1340_s10, %s1341_s8  ;;  %p1348_p2 = scmp.lt.s32.totalorder %s1346_s30, %s1341_s8 }
  0x33   : > { %p1344_p10 = pnand %p1343_p9, %p1342_p7  ;;  %p1349_p4 = por %p1348_p2, %p1347_p12 }
  0x35   : > { %p1345_p11 = pneg %p1344_p10 }
  0x37   : > { %p1350_p1 = pnand %p1349_p4, %p1345_p11 }
  0x39   : > { %1353 = shalt.err (!%p1350_p1)
}
  0x3a   : > { %1215 = dma.hbm_to_vmem [thread:$0]  (!%p1732_p8), %s409_s26, 128, %s411_s13, %s1745_s11  }
  0x3b   : > { %s1572_s17 = smov [#allocation10]   ;;  %s360_s10 = sshll.u32 %s1949_s9, 4  ;;  %s361_s10 = int_to_ptr.hbm [resolvable:$true] %s360_s10 }
  0x3c   : > { %s345_s23 = sshll.u32 %s1572_s17, 4  ;;  %s1985_s8 = smov 4   ;;  %s346_s23 = int_to_ptr.vmem [resolvable:$true] %s345_s23 }
  0x3d   : > { %s1986_s20 = smov 64   ;;  %s1573_s5 = smov [#allocation11]  }
  0x3e   : > { %1205 = dma.hbm_to_vmem [thread:$0]  (!%p1684_p6), %s344_s22, 256, %s346_s23, [#allocation9], %s1986_s20, %s1986_s20, %s1985_s8  }
  0x3f   : > { %s362_s30 = sshll.u32 %s1573_s5, 4  ;;  %s387_s16 = scalar_lea.hbm %s1940_s0, %s1730_s14  ;;  %s363_s30 = int_to_ptr.vmem [resolvable:$true] %s362_s30 }
  0x40   : > { %1208 = dma.hbm_to_vmem [thread:$0]  (!%p1684_p6), %s361_s10, 256, %s363_s30, [#allocation12], %s1986_s20, %s1986_s20, %s1985_s8  }
  0x41   : > { %s389_s17 = sshll.u32 %s387_s16, 4  ;;  %s383_s12 = scalar_lea.vmem [#allocation2], %s1727_s27  ;;  %s390_s17 = int_to_ptr.hbm [resolvable:$true] %s389_s17 }
  0x42   : > { %s391_s29 = sshll.u32 %s383_s12, 4  ;;  %s1987_s1 = sand.u32 1, %s1563_s19   ;;  %s392_s29 = int_to_ptr.vmem [resolvable:$true] %s391_s29 }
  0x43   : > { %s380_s22 = scalar_lea.sflag [#allocation3], %s1987_s1  ;;  %s1429_s23 = sshra.s32 %s390_s17, 4  ;;  %s1430_s23 = int_to_ptr.hbm [resolvable:$true] %s1429_s23 }
  0x44   : > { %s1431_s5 = scalar_lea.hbm %s1430_s23, 8  ;;  %s1436_s26 = scalar_lea.hbm %s1940_s0, 16 }
  0x45   : > { %p1432_p1 = scmp.ne.s32.totalorder %s1430_s23, %s1431_s5  ;;  %p1437_p6 = scmp.lt.s32.totalorder %s1430_s23, %s1940_s0 }
  0x46   : > { %p1438_p11 = scmp.lt.s32.totalorder %s1436_s26, %s1431_s5 }
  0x47   : > { %p1434_p7 = pnand %p1432_p1, %p1343_p9 }
  0x48   : > { %p1439_p12 = por %p1438_p11, %p1437_p6 }
  0x49   : > { %p1435_p10 = pneg %p1434_p7 }
  0x4b   : > { %p1440_p2 = pnand %p1439_p12, %p1435_p10 }
  0x4d   : > { %1443 = shalt.err (!%p1440_p2)
}
  0x4e   : > { %1212 = dma.hbm_to_vmem [thread:$0]  (!%p1732_p8), %s390_s17, 128, %s392_s29, %s380_s22  }
  0x4f   : > { %s425_s30 = scalar_lea.hbm %s1942_s2, %s1730_s14  ;;  %s421_s12 = scalar_lea.vmem [#allocation7], %s1727_s27 }
  0x50   : > { %s427_s16 = sshll.u32 %s425_s30, 4  ;;  %s429_s28 = sshll.u32 %s421_s12, 4  ;;  %s428_s16 = int_to_ptr.hbm [resolvable:$true] %s427_s16  ;;  %s430_s28 = int_to_ptr.vmem [resolvable:$true] %s429_s28 }
  0x51   : > { %s1459_s23 = sshra.s32 %s428_s16, 4  ;;  %s1466_s17 = scalar_lea.hbm %s1942_s2, 16  ;;  %s1460_s23 = int_to_ptr.hbm [resolvable:$true] %s1459_s23 }
  0x52   : > { %s1461_s5 = scalar_lea.hbm %s1460_s23, 8  ;;  %p1467_p10 = scmp.lt.s32.totalorder %s1460_s23, %s1942_s2 }
  0x53   : > { %p1462_p4 = scmp.ne.s32.totalorder %s1460_s23, %s1461_s5  ;;  %p1468_p6 = scmp.lt.s32.totalorder %s1466_s17, %s1461_s5 }
  0x55   : > { %p1464_p1 = pnand %p1462_p4, %p1343_p9  ;;  %p1469_p11 = por %p1468_p6, %p1467_p10 }
  0x57   : > { %p1465_p7 = pneg %p1464_p1 }
  0x59   : > { %p1470_p12 = pnand %p1469_p11, %p1465_p7 }
  0x5b   : > { %1473 = shalt.err (!%p1470_p12)
}
  0x5c   : > { %1218 = dma.hbm_to_vmem [thread:$0]  (!%p1732_p8), %s428_s16, 128, %s430_s28, %s1745_s11  }
  0x5d   : > { %438 = sbr.rel (%p1675_p3) target bundleno = 1735 (0x6c7), region = 64  ;;  %s1812_s27 = sand.u32 (!%p1675_p3), 1, %s1559_s18  }
  0x5e   : > { %s1815_s14 = sshll.u32 (!%p1675_p3), %s1812_s27, 3  ;;  %s441_s10 = scalar_lea.sflag (!%p1675_p3), [#allocation3], %s1812_s27 }
  0x5f   : > { %s444_s8 = scalar_lea.vmem (!%p1675_p3), [#allocation2], %s1815_s14 }
  0x62   : > { %1534 = dma.done.wait (%p1711_p13), %s441_s10, 128  }
  0x63   : > { %1536 = vsyncadd (%p1711_p13), %s441_s10, 4294967168  ;;  %s450_s11 = sand.u32 1, %s1670_s24  }
  0x64   : > { %s451_s25 = scalar_lea.sflag [#allocation6], %s450_s11 }
  0x65   : > { %1538 = dma.done.wait (%p1711_p13), %s451_s25, 256  }
  0x66   : > { %1540 = vsyncadd (%p1711_p13), %s451_s25, 4294967040  ;;  %s464_s15 = scalar_lea.vmem [#allocation7], %s1815_s14  ;;  %p1988_p3 = scmp.eq.s32.totalorder %s1670_s24, 0 }
  0x68   : > { %1542 = dma.done.wait (%p1988_p3), [#allocation9], 512   ;;  %p1989_p8 = pmov %p1988_p3 }
  0x69   : > { %p1990_p9 = pmov %p1988_p3 }
  0x6a   : > { %1544 = vsyncadd (%p1989_p8), [#allocation9], 4294966784 }
  0x6b   : > { %1546 = dma.done.wait (%p1990_p9), [#allocation12], 256   ;;  %p1991_p2 = pmov %p1988_p3 }
  0x6c   : > { %vm533_vm0 = vcmask 261120   ;;  %v1837_v0 = vld [vmem:[%s444_s8] sm:$0xff]  ;;  %v1574_v2 = vmov 32.0   ;;  %v1575_v14 = vmov 31.0   ;;  %v1174_v19 = vld [vmem:[#allocation8 + $0x8] sm:$0xff]  ;;  %v1173_v21 = vld [vmem:[#allocation8] sm:$0xff] }
  0x6d   : > { %1548 = vsyncadd (%p1991_p2), [#allocation12], 4294967040  ;;  %v534_v1 = vsel %vm533_vm0, %v1837_v0, 0.0  ;;  %1285 = vrcp.f32 %v1574_v2  ;;  %v1176_v20 = vld [vmem:[#allocation10 + $0x8] sm:$0xff]  ;;  %624 = vmatpush.bf16.msra.mxu0 %v1174_v19  ;;  %v1175_v22 = vld [vmem:[#allocation10] sm:$0xff]  ;;  %s1992_s5 = sld [smem:[#allocation27_spill]] }
  0x6e   : > { %535 = vadd.xlane.f32.xlu0 %v534_v1  ;;  %1287 = vrcp.f32 %v1575_v14  ;;  %657 = vmatpush.bf16.msra.mxu1 %v1176_v20  ;;  %v1280_v42 = vld [vmem:[%s1943_s3] ss:$0 sm:$0xff]  ;;  %vm668_vm9 = vcmask 64512   ;;  %s1576_s13 = smov 96   ;;  %s1577_s26 = smov 120   ;;  %vm710_vm10 = vcmask 1043456  }
  0x6f   : > { %v1281_v49 = vld [vmem:[%s1944_s4] ss:$0 sm:$0xff]  ;;  %s1578_s17 = smov 104   ;;  %s1579_s29 = smov 112   ;;  %vm914_vm12 = vcmask 130048   ;;  %vm916_vm13 = vcmask 195584  }
  0x70   : > { %v1282_v54 = vld [vmem:[%s1946_s6] ss:$0 sm:$0xff]  ;;  %s1580_s22 = smov 88   ;;  %s1581_s10 = smov 80  }
  0x71   : > { %625 = vmatpush.bf16.msra.mxu0 %v1173_v21  ;;  %s1582_s8 = smov 72   ;;  %s1583_s11 = smov 8  }
  0x72   : > { %658 = vmatpush.bf16.msra.mxu1 %v1175_v22  ;;  %s1584_s25 = smov 16   ;;  %s1170_s21 = sshll.u32 %s1670_s24, 3 }
  0x73   : > { %v1286_v3 = vpop.eup %1285  ;;  %v1283_v55 = vld [vmem:[%s1992_s5] ss:$0 sm:$0xff]  ;;  %s1993_s30 = sld [smem:[#allocation28_spill]]  ;;  %s958_s24 = scalar_lea.sflag [#allocation4], %s1812_s27 }
  0x74   : > { %v538_v4 = vmul.f32 32.0, %v1286_v3  ;;  %vm542_vm1 = vweird.f32 %v1286_v3  ;;  %v1288_v15 = vpop.eup %1287  ;;  %s1994_s28 = sld [smem:[#allocation29_spill]] }
  0x75   : > { %v551_v16 = vmul.f32 31.0, %v1288_v15  ;;  %vm555_vm2 = vweird.f32 %v1288_v15 }
  0x76   : > { %v539_v5 = vsub.f32 1.0, %v538_v4 }
  0x77   : > { %v552_v17 = vsub.f32 1.0, %v551_v16 }
  0x78   : > { %v540_v6 = vmul.f32 %v1286_v3, %v539_v5 }
  0x79   : > { %v553_v18 = vmul.f32 %v1288_v15, %v552_v17 }
  0x7a   : > { %v541_v7 = vadd.f32 %v1286_v3, %v540_v6  ;;  %s968_s5 = scalar_lea.hbm %s1994_s28, %s1170_s21 }
  0x7b   : > { %v554_v23 = vadd.f32 %v1288_v15, %v553_v18 }
  0x7c   : > { %v543_v8 = vsel %vm542_vm1, %v1286_v3, %v541_v7 }
  0x7d   : > { %v556_v24 = vsel %vm555_vm2, %v1288_v15, %v554_v23 }
  0xe1   : > { %v536_v9 = vpop.xlane.xlu0 %535 }
  0xe2   : > { %v544_v10 = vmul.f32 %v543_v8, %v536_v9 }
  0xe4   : > { %v545_v11 = vsub.f32 %v1837_v0, %v544_v10 }
  0xe6   : > { %v546_v12 = vmul.f32 %v545_v11, %v545_v11  ;;  %v561_v47 = vmul.f32 %v1280_v42, %v545_v11  ;;  %v667_v11 = vld [vmem:[%s464_s15] sm:$0xff]  ;;  %s1585_s15 = smov 24  }
  0xe7   : > { %vm688_vm11 = vcmp.eq.f32.partialorder %v667_v11, 0.0 }
  0xe8   : > { %v547_v13 = vsel %vm533_vm0, %v546_v12, 0.0 }
  0xe9   : > { %548 = vadd.xlane.f32.xlu0 %v547_v13 }
 0x15c   : > { %v549_v25 = vpop.xlane.xlu0 %548 }
 0x15d   : > { %v557_v26 = vmul.f32 %v556_v24, %v549_v25 }
 0x15f   : > { %1289 = vrsqrt.f32 %v557_v26  ;;  %vm569_vm3 = vcmp.eq.f32.partialorder %v557_v26, inf  ;;  %v572_v34 = vand.u32 2147483648, %v557_v26  ;;  %vm571_vm4 = vcmp.eq.f32.partialorder %v557_v26, 0.0 }
 0x165   : > { %v1290_v27 = vpop.eup %1289 }
 0x166   : > { %v563_v28 = vmul.f32 %v1290_v27, %v557_v26 }
 0x168   : > { %v564_v29 = vmul.f32 %v1290_v27, %v563_v28 }
 0x16a   : > { %v565_v30 = vmul.f32 0.5, %v564_v29 }
 0x16c   : > { %v566_v31 = vsub.f32 1.5, %v565_v30 }
 0x16e   : > { %v567_v32 = vmul.f32 %v1290_v27, %v566_v31 }
 0x170   : > { %v568_v33 = vmul.f32 %v567_v32, %v557_v26 }
 0x172   : > { %v570_v35 = vsel %vm569_vm3, %v557_v26, %v568_v33 }
 0x173   : > { %v573_v36 = vsel %vm571_vm4, %v572_v34, %v570_v35 }
 0x174   : > { %v574_v37 = vadd.f32 1e-06, %v573_v36 }
 0x176   : > { %1291 = vrcp.f32 %v574_v37  ;;  %v586_v41 = vand.u32 2147483648, %v574_v37  ;;  %v584_v44 = vand.u32 2147483647, %v574_v37  ;;  %vm580_vm6 = vweird.f32 %v574_v37 }
 0x178   : > { %v587_v46 = vor.u32 1.1754944e-38, %v586_v41  ;;  %vm585_vm8 = vcmp.eq.f32.partialorder %v584_v44, 8.507059e+37 }
 0x17c   : > { %v1292_v38 = vpop.eup %1291 }
 0x17d   : > { %v576_v39 = vmul.f32 %v1292_v38, %v574_v37  ;;  %vm581_vm5 = vweird.f32 %v1292_v38 }
 0x17e   : > { %vm582_vm7 = vmor %vm580_vm6, %vm581_vm5 }
 0x17f   : > { %v577_v40 = vsub.f32 1.0, %v576_v39 }
 0x181   : > { %v578_v43 = vmul.f32 %v1292_v38, %v577_v40 }
 0x183   : > { %v579_v45 = vadd.f32 %v1292_v38, %v578_v43 }
 0x185   : > { %v583_v48 = vsel %vm582_vm7, %v1292_v38, %v579_v45 }
 0x186   : > { %v588_v50 = vsel %vm585_vm8, %v587_v46, %v583_v48 }
 0x187   : > { %v589_v51 = vmul.f32 %v588_v50, %v561_v47 }
 0x189   : > { %v593_v52 = vadd.f32 %v1281_v49, %v589_v51 }
 0x18b   : > { %v594_v53 = vpack.c.bf16 %v593_v52, %v593_v52 }
 0x18d   : > { %1142 = vmatmul.msk.bf16.vlgmr.msra.gmra.mxu0 %vm533_vm0, %v594_v53  ;;  %1151 = vmatmul.msk.bf16.vlgmr.msra.gmra.mxu1 %vm533_vm0, %v594_v53 }
 0x20a   : > { %v627_v56 = vpop.f32.mrf.mxu0  ;;  %v660_v57 = vpop.f32.mrf.mxu1 }
 0x20b   : > { %v628_v58 = vadd.f32 %v1282_v54, %v627_v56  ;;  %v661_v59 = vadd.f32 %v1283_v55, %v660_v57 }
 0x20d   : > { %v664_v60 = vmul.f32 0.35355338, %v628_v58  ;;  %v666_v61 = vpack.c.bf16 %v661_v59, %v661_v59 }
 0x20f   : > { %v665_v62 = vpack.c.bf16 %v664_v60, %v664_v60  ;;  %v703_v63 = vunpack.c.l.b16 %v666_v61  ;;  %v673_v1 = vsel %vm668_vm9, %v666_v61, 0 }
 0x210   : > { %682 = vmatpush.bf16.xpose.msra.mxu2 %v673_v1 }
 0x211   : > { %v728_v2 = vunpack.c.l.b16 %v665_v62  ;;  %v1858_v3 = vpack.c.b16 %v703_v63, %v703_v63 }
 0x212   : > { %v629_v4 = vpop.f32.mrf.mxu0  ;;  %v662_v5 = vpop.f32.mrf.mxu1 }
 0x213   : > { %705 = vrot.lane.b32.xlu2 %v1858_v3, %s1576_s13  ;;  %v729_v6 = vpack.c.b16 %v728_v2, %v728_v2  ;;  %s528_s13 = scalar_lea.vmem [#allocation13], %s1815_s14  ;;  %s1509_s14 = scalar_lea.hbm %s1994_s28, 16 }
 0x215   : > { %730 = vrot.lane.b32.xlu0 %v729_v6, %s1577_s26 }
 0x217   : > { %1152 = vmatmul.msk.bf16.vlgmr.msra.gmra.mxu2 %vm668_vm9, %v665_v62 }
 0x21b   : > { %732 = vrot.lane.b32.xlu2 %v1858_v3, %s1577_s26  ;;  %s970_s26 = sshll.u32 %s528_s13, 4  ;;  %s971_s26 = int_to_ptr.vmem [resolvable:$true] %s970_s26 }
 0x223   : > { %846 = vrot.lane.b32.xlu2 %v1858_v3, %s1578_s17 }
 0x22b   : > { %787 = vrot.lane.b32.xlu2 %v729_v6, %s1579_s29 }
 0x233   : > { %844 = vrot.lane.b32.xlu2 %v729_v6, %s1578_s17  ;;  %s972_s17 = sshll.u32 %s968_s5, 4  ;;  %s973_s17 = int_to_ptr.hbm [resolvable:$true] %s972_s17 }
 0x26d   : > { %v706_v7 = vpop.permute.xlu2 %705 }
 0x26e   : > { %v712_v8 = vsel %vm710_vm10, %v706_v7, 0 }
 0x26f   : > { %721 = vmatpush.bf16.msra.mxu3 %v712_v8 }
 0x275   : > { %v733_v9 = vpop.permute.xlu2 %732 }
 0x276   : > { %v738_v10 = vsel %vm668_vm9, %v733_v9, 0 }
 0x277   : > { %747 = vmatpush.bf16.xpose.msrb.mxu3 %v738_v10 }
 0x27d   : > { %v847_v24 = vpop.permute.xlu2 %846 }
 0x27e   : > { %v852_v26 = vsel %vm668_vm9, %v847_v24, 0 }
 0x285   : > { %v788_v30 = vpop.permute.xlu2 %787 }
 0x287   : > { %v731_v29 = vpop.permute.xlu0 %730 }
 0x28d   : > { %v845_v31 = vpop.permute.xlu2 %844 }
 0x29a   : > { %v684_v12 = vpop.f32.mrf.mxu2 }
 0x29b   : > { %v689_v13 = vsel %vm688_vm11, -1e+09, %v684_v12 }
 0x29c   : > { %v690_v14 = vsel %vm668_vm9, %v689_v13, -inf }
 0x29d   : > { %691 = vmax.xlane.f32.xlu1 %v690_v14 }
 0x2a2   : > { %v686_v15 = vpop.f32.mrf.mxu2 }
 0x310   : > { %v692_v16 = vpop.xlane.xlu1 %691 }
 0x311   : > { %v693_v17 = vsub.f32 %v689_v13, %v692_v16 }
 0x313   : > { %v694_v18 = vmul.f32 1.442695, %v693_v17 }
 0x315   : > { %1293 = vpow2.f32 %v694_v18 }
 0x31b   : > { %v1294_v19 = vpop.eup %1293 }
 0x31c   : > { %v696_v20 = vsel %vm668_vm9, %v1294_v19, 0.0 }
 0x31d   : > { %697 = vadd.xlane.f32.xlu1 %v696_v20 }
 0x336   : > { %789 = vrot.lane.b32.xlu1 %v1858_v3, %s1579_s29  ;;  %s1503_s29 = sshra.s32 %s973_s17, 4  ;;  %s1504_s29 = int_to_ptr.hbm [resolvable:$true] %s1503_s29 }
 0x337   : > { %p1510_p7 = scmp.lt.s32.totalorder %s1504_s29, %s1994_s28 }
 0x390   : > { %v698_v21 = vpop.xlane.xlu1 %697 }
 0x391   : > { %1295 = vrcp.f32 %v698_v21 }
 0x397   : > { %v1296_v22 = vpop.eup %1295 }
 0x398   : > { %v700_v23 = vmul.f32 %v1296_v22, %v1294_v19  ;;  %v1178_v22 = vld [vmem:[#allocation11 + $0x8] sm:$0xff] }
 0x39a   : > { %v701_v25 = vpack.c.bf16 %v700_v23, %v700_v23  ;;  %v1177_v23 = vld [vmem:[#allocation11] sm:$0xff] }
 0x39c   : > { %1153 = vmatmul.msk.bf16.vlgmr.msra.gmra.mxu3 %vm668_vm9, %v701_v25 }
 0x39d   : > { %861 = vmatpush.bf16.xpose.msra.mxu3 %v852_v26 }
 0x3a8   : > { %v790_v27 = vpop.permute.xlu1 %789 }
 0x3a9   : > { %v795_v28 = vsel %vm668_vm9, %v790_v27, 0 }
 0x3aa   : > { %804 = vmatpush.bf16.xpose.msrb.mxu1 %v795_v28 }
 0x3ac   : > { %1154 = vmatmul.msk.bf16.vlgmr.msrb.gmra.mxu3 %vm668_vm9, %v731_v29 }
 0x3b1   : > { %1156 = vmatmul.msk.bf16.vlgmr.msrb.gmra.mxu1 %vm668_vm9, %v788_v30 }
 0x3b2   : > { %948 = vmatpush.bf16.msra.mxu1 %v1178_v22 }
 0x3b6   : > { %949 = vmatpush.bf16.msra.mxu1 %v1177_v23 }
 0x3bc   : > { %1158 = vmatmul.msk.bf16.vlgmr.msra.gmra.mxu3 %vm668_vm9, %v845_v31  ;;  %v1284_v31 = vld [vmem:[%s1993_s30] ss:$0 sm:$0xff] }
 0x41f   : > { %v1878_v32 = vpop.f32.mrf.mxu3 }
 0x427   : > { %v725_v33 = vpop.f32.mrf.mxu3 }
 0x42e   : > { %v806_v34 = vpop.f32.mrf.mxu1 }
 0x42f   : > { %v810_v35 = vsel %vm688_vm11, -1e+09, %v806_v34  ;;  %v749_v36 = vpop.f32.mrf.mxu3 }
 0x430   : > { %v753_v37 = vsel %vm688_vm11, -1e+09, %v749_v36  ;;  %v811_v38 = vsel %vm668_vm9, %v810_v35, -inf }
 0x431   : > { %812 = vmax.xlane.f32.xlu2 %v811_v38  ;;  %v754_v39 = vsel %vm668_vm9, %v753_v37, -inf }
 0x432   : > { %755 = vmax.xlane.f32.xlu0 %v754_v39 }
 0x436   : > { %v808_v40 = vpop.f32.mrf.mxu1 }
 0x437   : > { %v751_v41 = vpop.f32.mrf.mxu3 }
 0x43f   : > { %v863_v42 = vpop.f32.mrf.mxu3 }
 0x440   : > { %v867_v43 = vsel %vm688_vm11, -1e+09, %v863_v42 }
 0x441   : > { %v868_v44 = vsel %vm668_vm9, %v867_v43, -inf }
 0x442   : > { %869 = vmax.xlane.f32.xlu1 %v868_v44 }
 0x447   : > { %v865_v45 = vpop.f32.mrf.mxu3 }
 0x449   : > { %766 = vrot.lane.b32.xlu2 %v1858_v3, %s1580_s22  ;;  %s1505_s22 = scalar_lea.hbm %s1504_s29, 8 }
 0x44a   : > { %p1506_p13 = scmp.ne.s32.totalorder %s1504_s29, %s1505_s22  ;;  %p1511_p10 = scmp.lt.s32.totalorder %s1509_s14, %s1505_s22 }
 0x44c   : > { %p1507_p4 = pnand %p1506_p13, %p1715_p0  ;;  %p1512_p6 = por %p1511_p10, %p1510_p7 }
 0x44e   : > { %p1508_p1 = pneg %p1507_p4 }
 0x450   : > { %p1513_p11 = pnand %p1512_p6, %p1508_p1 }
 0x4a4   : > { %v813_v46 = vpop.xlane.xlu2 %812 }
 0x4a5   : > { %v814_v47 = vsub.f32 %v810_v35, %v813_v46  ;;  %v756_v48 = vpop.xlane.xlu0 %755 }
 0x4a6   : > { %v757_v49 = vsub.f32 %v753_v37, %v756_v48 }
 0x4a7   : > { %v815_v50 = vmul.f32 1.442695, %v814_v47 }
 0x4a8   : > { %v758_v51 = vmul.f32 1.442695, %v757_v49 }
 0x4a9   : > { %1297 = vpow2.f32 %v815_v50 }
 0x4aa   : > { %1299 = vpow2.f32 %v758_v51 }
 0x4ac   : > { %v767_v52 = vpop.permute.xlu2 %766 }
 0x4ad   : > { %v772_v53 = vsel %vm710_vm10, %v767_v52, 0 }
 0x4ae   : > { %781 = vmatpush.bf16.msrb.mxu0 %v772_v53 }
 0x4af   : > { %v1298_v54 = vpop.eup %1297 }
 0x4b0   : > { %v1300_v55 = vpop.eup %1299  ;;  %v817_v56 = vsel %vm668_vm9, %v1298_v54, 0.0 }
 0x4b1   : > { %818 = vadd.xlane.f32.xlu1 %v817_v56  ;;  %v760_v57 = vsel %vm668_vm9, %v1300_v55, 0.0 }
 0x4b2   : > { %761 = vadd.xlane.f32.xlu0 %v760_v57 }
 0x4b5   : > { %v870_v58 = vpop.xlane.xlu1 %869 }
 0x4b6   : > { %v871_v59 = vsub.f32 %v867_v43, %v870_v58 }
 0x4b8   : > { %v872_v60 = vmul.f32 1.442695, %v871_v59 }
 0x4ba   : > { %1301 = vpow2.f32 %v872_v60 }
 0x4c0   : > { %v1302_v61 = vpop.eup %1301 }
 0x4c1   : > { %v874_v62 = vsel %vm668_vm9, %v1302_v61, 0.0 }
 0x4c2   : > { %875 = vadd.xlane.f32.xlu0 %v874_v62 }
 0x4ca   : > { %823 = vrot.lane.b32.xlu1 %v1858_v3, %s1581_s10 }
 0x4d6   : > { %880 = vrot.lane.b32.xlu0 %v1858_v3, %s1582_s8 }
 0x524   : > { %v819_v4 = vpop.xlane.xlu1 %818 }
 0x525   : > { %v762_v63 = vpop.xlane.xlu0 %761 }
 0x526   : > { %1303 = vrcp.f32 %v762_v63 }
 0x527   : > { %1305 = vrcp.f32 %v819_v4 }
 0x52c   : > { %v1304_v1 = vpop.eup %1303 }
 0x52d   : > { %v764_v2 = vmul.f32 %v1304_v1, %v1300_v55  ;;  %v1306_v6 = vpop.eup %1305 }
 0x52e   : > { %v821_v7 = vmul.f32 %v1306_v6, %v1298_v54 }
 0x52f   : > { %v765_v5 = vpack.c.bf16 %v764_v2, %v764_v2 }
 0x530   : > { %v822_v11 = vpack.c.bf16 %v821_v7, %v821_v7 }
 0x531   : > { %1155 = vmatmul.msk.bf16.vlgmr.msrb.gmra.mxu0 %vm668_vm9, %v765_v5 }
 0x535   : > { %v876_v8 = vpop.xlane.xlu0 %875 }
 0x536   : > { %1307 = vrcp.f32 %v876_v8 }
 0x53c   : > { %v824_v9 = vpop.permute.xlu1 %823  ;;  %v1308_v3 = vpop.eup %1307 }
 0x53d   : > { %v829_v10 = vsel %vm710_vm10, %v824_v9, 0  ;;  %v878_v12 = vmul.f32 %v1308_v3, %v1302_v61 }
 0x53e   : > { %838 = vmatpush.bf16.msrb.mxu2 %v829_v10 }
 0x53f   : > { %v879_v15 = vpack.c.bf16 %v878_v12, %v878_v12 }
 0x541   : > { %1157 = vmatmul.msk.bf16.vlgmr.msrb.gmra.mxu2 %vm668_vm9, %v822_v11 }
 0x548   : > { %v881_v13 = vpop.permute.xlu0 %880 }
 0x549   : > { %v886_v14 = vsel %vm710_vm10, %v881_v13, 0 }
 0x54a   : > { %895 = vmatpush.bf16.msra.mxu0 %v886_v14 }
 0x54d   : > { %1159 = vmatmul.msk.bf16.vlgmr.msra.gmra.mxu0 %vm668_vm9, %v879_v15 }
 0x5ae   : > { %v783_v16 = vpop.f32.mrf.mxu0 }
 0x5af   : > { %902 = vrot.lane.b32.xlu2 %v783_v16, %s1583_s11 }
 0x5b6   : > { %v785_v17 = vpop.f32.mrf.mxu0 }
 0x5c4   : > { %v840_v18 = vpop.f32.mrf.mxu2 }
 0x5c5   : > { %906 = vrot.lane.b32.xlu2 %v840_v18, %s1584_s25 }
 0x5ca   : > { %v897_v19 = vpop.f32.mrf.mxu0 }
 0x5cb   : > { %910 = vrot.lane.b32.xlu0 %v897_v19, %s1585_s15 }
 0x5cc   : > { %v842_v20 = vpop.f32.mrf.mxu2 }
 0x5d2   : > { %v899_v21 = vpop.f32.mrf.mxu0 }
 0x609   : > { %v903_v24 = vpop.permute.xlu2 %902 }
 0x60a   : > { %v913_v26 = vsel %vm668_vm9, %v1878_v32, %v903_v24 }
 0x61f   : > { %v907_v25 = vpop.permute.xlu2 %906 }
 0x620   : > { %v915_v27 = vsel %vm914_vm12, %v913_v26, %v907_v25 }
 0x63d   : > { %v911_v28 = vpop.permute.xlu0 %910 }
 0x63e   : > { %v917_v29 = vsel %vm916_vm13, %v915_v27, %v911_v28 }
 0x63f   : > { %v918_v30 = vpack.c.bf16 %v917_v29, %v917_v29 }
 0x641   : > { %1168 = vmatmul.msk.bf16.vlgmr.msra.gmra.mxu1 %vm533_vm0, %v918_v30 }
 0x6be   : > { %v951_v33 = vpop.f32.mrf.mxu1 }
 0x6bf   : > { %v952_v32 = vadd.f32 %v1284_v31, %v951_v33 }
 0x6c1   : > { %v955_v34 = vadd.f32 %v952_v32, %v1837_v0 }
 0x6c3   : > { %956 = vst.msk [vmem:[%s528_s13] sm:$0xff] %vm533_vm0, %v955_v34 }
 0x6c4   : > { %1516 = shalt.err (!%p1513_p11)
}
 0x6c5   : > { %1197 = dma.vmem_to_hbm [thread:$0]  (%p1715_p0), %s971_s26, 128, %s973_s17, %s958_s24  }
 0x6c6   : > { %v953_v0 = vpop.f32.mrf.mxu1 }
 0x6c7 PF: > { %s1996_s27 = sld [smem:[#allocation19_spill]] }
 0x6c8   : > { %s1998_s21 = sld [smem:[#allocation20_spill]] }
 0x6cd   : > { %s984_s1 = sand.u32 1, %s1996_s27  }
 0x6ce   : > { %p1999_p12 = scmp.ge.s32.totalorder %s1998_s21, 2  ;;  %s985_s20 = scalar_lea.sflag [#allocation4], %s984_s1 }
 0x6d0   : > { %p1220_p3 = pnand %p1999_p12, %p1721_p5 }
 0x6d2   : > { %p1221_p8 = pneg %p1220_p3 }
 0x6d4   : > { %1550 = dma.done.wait (%p1221_p8), %s985_s20, 128  }
 0x6d5   : > { %1552 = vsyncadd (%p1221_p8), %s985_s20, 4294967168  ;;  %s2000_s20 = sld [smem:[#allocation21_spill]]  ;;  %s2002_s17 = smov %s1559_s18 }
 0x6d6   : > { %s2001_s30 = sld [smem:[#allocation22_spill]]  ;;  %s2003_s18 = smov %s1563_s19 }
 0x6db   : > { %p29_p9 = scmp.ge.s32.totalorder %s2000_s20, 4  }
 0x6dc   : > { %s2004_s19 = smov %s2001_s30 }
 0x6dd   :  { %31 = sbr.rel (!%p29_p9) target bundleno = 15 (0xf), region = 145 }
 0x6e2   :  { %991 = vsyncpa [#allocation3], 1 }
 0x6e3   :  { %993 = vsyncpa [#allocation3 + $0x1], 1 }
 0x6e4   :  { %994 = vsyncpa [#allocation6], 1 }
 0x6e5   :  { %996 = vsyncpa [#allocation6 + $0x1], 1 }
 0x6e6   :  { %997 = vsyncpa [#allocation9], 1 }
 0x6e7   :  { %998 = vsyncpa [#allocation12], 1 }
 0x6e8   :  { %999 = vsyncpa [#allocation4], 1 }
 0x6e9   :  { %1001 = vsyncpa [#allocation4 + $0x1], 1 }

</bundles_post_ra>
